<compile_context>
chip_gen: v6e
topology: v6e:2x2x1
jax: 0.10.0
libtpu: 0.0.40
codegen_flags: <defaults>
</compile_context>

<pallas_src>
import functools

import jax
import jax.numpy as jnp
from jax.experimental import pallas as pl
from jax.experimental.pallas import tpu as pltpu


# ---------------------------------------------------------------------------
# Layer-1 kernel: big streaming matmul  y = relu?(x @ W + b)
# ---------------------------------------------------------------------------
def _linear_kernel(x_ref, w_ref, b_ref, o_ref, *, relu):
    k = pl.program_id(1)

    @pl.when(k == 0)
    def _init():
        o_ref[...] = jnp.zeros_like(o_ref)

    # bf16 x bf16 on the MXU, f32 accumulation directly into the resident
    # output block (output BlockSpec is constant along the K axis).
    o_ref[...] += jnp.dot(x_ref[...].astype(w_ref.dtype), w_ref[...],
                          preferred_element_type=jnp.float32)

    @pl.when(k == pl.num_programs(1) - 1)
    def _finish():
        y = o_ref[...] + b_ref[...]
        if relu:
            y = jnp.maximum(y, 0.0)
        o_ref[...] = y


def _pick_tile(d, candidates):
    for t in candidates:
        if d % t == 0:
            return t
    return d  # small dims (< 128): one full-width block


def linear(x, w, b, *, relu):
    """x: (B, D) f32; w: (D, N) bf16/f32; b: (1, N) f32 -> (B, N) f32."""
    B, D = x.shape
    N = w.shape[1]
    tk = _pick_tile(D, (4096, 2048, 1024, 512, 256, 128))
    tn = _pick_tile(N, (512, 256, 128))
    grid = (N // tn, D // tk)  # reduction axis last
    return pl.pallas_call(
        functools.partial(_linear_kernel, relu=relu),
        out_shape=jax.ShapeDtypeStruct((B, N), jnp.float32),
        grid=grid,
        in_specs=[
            pl.BlockSpec((B, tk), lambda j, k: (0, k)),
            pl.BlockSpec((tk, tn), lambda j, k: (k, j)),
            pl.BlockSpec((1, tn), lambda j, k: (0, j)),
        ],
        out_specs=pl.BlockSpec((B, tn), lambda j, k: (0, j)),
        compiler_params=pltpu.CompilerParams(
            dimension_semantics=("parallel", "arbitrary"),
            vmem_limit_bytes=48 << 20,
        ),
    )(x, w, b)


# ---------------------------------------------------------------------------
# Fused tail kernel: (lin2 -> relu -> dropout[eval=id] -> lin3), all in VMEM.
# All operands are lane-dense (hidden and output dims padded to 128).
# ---------------------------------------------------------------------------
def _tail_kernel(x_ref, w2_ref, b2_ref, w3_ref, b3_ref, o_ref):
    h = jnp.dot(x_ref[...].astype(w2_ref.dtype), w2_ref[...],
                preferred_element_type=jnp.float32)
    h = jnp.maximum(h + b2_ref[...], 0.0)
    # Dropout: eval mode -> identity.
    o_ref[...] = jnp.dot(h.astype(w3_ref.dtype), w3_ref[...],
                         preferred_element_type=jnp.float32) + b3_ref[...]


def tail(x, w2_pad, b2_pad, w3_pad, b3_pad):
    B, D = x.shape
    Hpad = w2_pad.shape[1]
    Npad = w3_pad.shape[1]
    return pl.pallas_call(
        _tail_kernel,
        out_shape=jax.ShapeDtypeStruct((B, Npad), jnp.float32),
        grid=(1,),
        in_specs=[
            pl.BlockSpec((B, D), lambda i: (0, 0)),
            pl.BlockSpec((D, Hpad), lambda i: (0, 0)),
            pl.BlockSpec((1, Hpad), lambda i: (0, 0)),
            pl.BlockSpec((Hpad, Npad), lambda i: (0, 0)),
            pl.BlockSpec((1, Npad), lambda i: (0, 0)),
        ],
        out_specs=pl.BlockSpec((B, Npad), lambda i: (0, 0)),
        compiler_params=pltpu.CompilerParams(
            dimension_semantics=("arbitrary",)),
    )(x, w2_pad, b2_pad, w3_pad, b3_pad)


# ---------------------------------------------------------------------------
# Parameters (PyTorch defaults) with host-side BN folding + bf16 weights.
# ---------------------------------------------------------------------------
def _init_linear(key, d_in, d_out):
    """PyTorch nn.Linear default init: U(-1/sqrt(fan_in), 1/sqrt(fan_in))."""
    kw, kb = jax.random.split(key)
    bound = 1.0 / jnp.sqrt(jnp.float32(d_in))
    # stored as (in, out) so kernels compute x @ W (== x @ W_pt.T)
    w = jax.random.uniform(kw, (d_in, d_out), jnp.float32, -bound, bound)
    b = jax.random.uniform(kb, (1, d_out), jnp.float32, -bound, bound)
    return w, b


def _init_bn(d, eps=1e-5):
    """BatchNorm1d eval defaults: gamma=1, beta=0, running mean=0, var=1."""
    gamma = jnp.ones((1, d), jnp.float32)
    beta = jnp.zeros((1, d), jnp.float32)
    running_mean = jnp.zeros((1, d), jnp.float32)
    running_var = jnp.ones((1, d), jnp.float32)
    scale = gamma / jnp.sqrt(running_var + eps)
    shift = beta - running_mean * scale
    return scale, shift


def _fold_bn(scale, shift, w, b):
    """(x*scale + shift) @ W + b  ==  x @ (scale.T * W) + (shift @ W + b)."""
    return scale.reshape(-1, 1) * w, b + shift @ w


def _pad_cols(a, n_to):
    return jnp.zeros((a.shape[0], n_to), a.dtype).at[:, :a.shape[1]].set(a)


def _pad_rows(a, n_to):
    return jnp.zeros((n_to, a.shape[1]), a.dtype).at[:a.shape[0], :].set(a)


def make_svm_params(key, d0, num_class):
    k1, k2, k3 = jax.random.split(key, 3)

    s1, h1 = _init_bn(d0)
    w1, b1 = _init_linear(k1, d0, 1024)
    w1, b1 = _fold_bn(s1, h1, w1, b1)

    s2, h2 = _init_bn(1024)
    w2, b2 = _init_linear(k2, 1024, 64)
    w2, b2 = _fold_bn(s2, h2, w2, b2)

    s3, h3 = _init_bn(64)
    w3, b3 = _init_linear(k3, 64, num_class)
    w3, b3 = _fold_bn(s3, h3, w3, b3)

    # Stream the big weights in bf16 (f32 accumulation stays in-kernel).
    w1 = w1.astype(jnp.bfloat16)
    w2 = w2.astype(jnp.bfloat16)

    # Pad the hidden dim (64 -> 128) and classifier columns to lane-dense
    # multiples of 128.  Zero padding is exact: relu(0 + 0) = 0 and the padded
    # W3 rows are zero, so the padded columns never contribute to the output.
    h_pad = 128
    n_pad = max(128, -(-num_class // 128) * 128)
    w2_pad = _pad_cols(w2, h_pad)
    b2_pad = _pad_cols(b2, h_pad)
    w3_pad = _pad_rows(_pad_cols(w3, n_pad), h_pad)
    b3_pad = _pad_cols(b3, n_pad)

    return {"w1": w1, "b1": b1,
            "w2": w2_pad, "b2": b2_pad,
            "w3": w3_pad, "b3": b3_pad}


@functools.partial(jax.jit, static_argnames=("num_class",))
def svm_forward(x_nchw, params, num_class):
    B = x_nchw.shape[0]
    x = x_nchw.reshape(B, -1)                 # nn.Flatten on NCHW
    x = linear(x, params["w1"], params["b1"], relu=True)
    out = tail(x, params["w2"], params["b2"], params["w3"], params["b3"])
    return out[:, :num_class]                 # strip lane padding


def svm_reference(x_nchw, params, num_class):
    """Plain-JAX f32 reference (bf16 weights upcast) for correctness check."""
    B = x_nchw.shape[0]
    x = x_nchw.reshape(B, -1)
    w1 = params["w1"].astype(jnp.float32)
    w2 = params["w2"].astype(jnp.float32)
    x = jnp.maximum(x @ w1 + params["b1"], 0.0)
    x = jnp.maximum(x @ w2 + params["b2"], 0.0)
    return (x @ params["w3"] + params["b3"])[:, :num_class]


if __name__ == "__main__":
    # Original module hard-codes 196608 = 3*256*256 input features; identical
    # architecture here but with a small spatial size for the demo (the
    # flattened dim 768 still exercises the multi-step K reduction: tk=256).
    B, C, H, W = 8, 3, 16, 16                 # flattened feature dim = 768
    NUM_CLASS = 10

    key = jax.random.PRNGKey(0)
    kx, kp = jax.random.split(key)
    x = jax.random.normal(kx, (B, C, H, W), jnp.float32)
    params = make_svm_params(kp, C * H * W, NUM_CLASS)

    out = svm_forward(x, params, NUM_CLASS)
    out = jax.block_until_ready(out)

    ref = svm_reference(x, params, NUM_CLASS)
    assert out.shape == (B, NUM_CLASS), out.shape
    # bf16 weight/activation streaming -> loosen tolerance vs. the f32 ref.
    assert jnp.allclose(out, ref, atol=2e-2, rtol=2e-2), (
        float(jnp.max(jnp.abs(out - ref))))

    print("KERNEL_OK")
</pallas_src>

<mosaic_0001>
module attributes {stable_mosaic.version = 11 : i64} {
  func.func @_tail_kernel(%arg0: i32, %arg1: memref<8x1024xf32, #tpu.memory_space<vmem>>, %arg2: memref<1024x128xbf16, #tpu.memory_space<vmem>>, %arg3: memref<1x128xf32, #tpu.memory_space<vmem>>, %arg4: memref<128x128xf32, #tpu.memory_space<vmem>>, %arg5: memref<1x128xf32, #tpu.memory_space<vmem>>, %arg6: memref<8x128xf32, #tpu.memory_space<vmem>>) attributes {dimension_semantics = [#tpu.dimension_semantics<arbitrary>], iteration_bounds = array<i64: 1>, scalar_prefetch = 0 : i64, scratch_operands = 0 : i64, tpu.core_type = #tpu.core_type<tc>, window_params = [{pipeline_mode = #tpu.pipeline_mode<synchronous>, transform_indices = @transform_0, window_bounds = array<i64: 8, 1024>}, {pipeline_mode = #tpu.pipeline_mode<synchronous>, transform_indices = @transform_1, window_bounds = array<i64: 1024, 128>}, {pipeline_mode = #tpu.pipeline_mode<synchronous>, transform_indices = @transform_2, window_bounds = array<i64: 1, 128>}, {pipeline_mode = #tpu.pipeline_mode<synchronous>, transform_indices = @transform_3, window_bounds = array<i64: 128, 128>}, {pipeline_mode = #tpu.pipeline_mode<synchronous>, transform_indices = @transform_4, window_bounds = array<i64: 1, 128>}, {pipeline_mode = #tpu.pipeline_mode<synchronous>, transform_indices = @transform_5, window_bounds = array<i64: 8, 128>}]} {
    %c0 = arith.constant 0 : index
    %c0_0 = arith.constant 0 : index
    %0 = vector.load %arg1[%c0, %c0_0] : memref<8x1024xf32, #tpu.memory_space<vmem>>, vector<8x1024xf32>
    %1 = arith.truncf %0 : vector<8x1024xf32> to vector<8x1024xbf16>
    %c0_1 = arith.constant 0 : index
    %c0_2 = arith.constant 0 : index
    %2 = vector.load %arg2[%c0_1, %c0_2] : memref<1024x128xbf16, #tpu.memory_space<vmem>>, vector<1024x128xbf16>
    %cst = arith.constant dense<0.000000e+00> : vector<8x128xf32>
    %3 = tpu.matmul %1, %2, %cst {dimension_numbers = #tpu.dot_dimension_numbers<[1], [0], [0], [1], [0, 0, 1, 1], [], []>} : vector<8x1024xbf16>, vector<1024x128xbf16>, vector<8x128xf32> -> vector<8x128xf32>
    %c0_3 = arith.constant 0 : index
    %c0_4 = arith.constant 0 : index
    %4 = vector.load %arg3[%c0_3, %c0_4] : memref<1x128xf32, #tpu.memory_space<vmem>>, vector<1x128xf32>
    %5 = vector.broadcast %4 : vector<1x128xf32> to vector<8x128xf32>
    %6 = arith.addf %3, %5 : vector<8x128xf32>
    %cst_5 = arith.constant 0.000000e+00 : f32
    %7 = vector.broadcast %cst_5 : f32 to vector<8x128xf32>
    %8 = arith.maximumf %6, %7 : vector<8x128xf32>
    %c0_6 = arith.constant 0 : index
    %c0_7 = arith.constant 0 : index
    %9 = vector.load %arg4[%c0_6, %c0_7] : memref<128x128xf32, #tpu.memory_space<vmem>>, vector<128x128xf32>
    %cst_8 = arith.constant dense<0.000000e+00> : vector<8x128xf32>
    %10 = tpu.matmul %8, %9, %cst_8 {dimension_numbers = #tpu.dot_dimension_numbers<[1], [0], [0], [1], [0, 0, 1, 1], [], []>} : vector<8x128xf32>, vector<128x128xf32>, vector<8x128xf32> -> vector<8x128xf32>
    %c0_9 = arith.constant 0 : index
    %c0_10 = arith.constant 0 : index
    %11 = vector.load %arg5[%c0_9, %c0_10] : memref<1x128xf32, #tpu.memory_space<vmem>>, vector<1x128xf32>
    %12 = vector.broadcast %11 : vector<1x128xf32> to vector<8x128xf32>
    %13 = arith.addf %10, %12 : vector<8x128xf32>
    %c0_11 = arith.constant 0 : index
    %c0_12 = arith.constant 0 : index
    %14 = vector.load %arg6[%c0_11, %c0_12] : memref<8x128xf32, #tpu.memory_space<vmem>>, vector<8x128xf32>
    tpu.vector_store %arg6[%c0_11, %c0_12], %13 {strides = array<i32>} : memref<8x128xf32, #tpu.memory_space<vmem>>, vector<8x128xf32>,
    return
  }
  func.func @transform_0(%arg0: i32) -> (i32, i32) {
    %c0_i32 = arith.constant 0 : i32
    %c0_i32_0 = arith.constant 0 : i32
    %c0_i32_1 = arith.constant 0 : i32
    return %c0_i32, %c0_i32_0 : i32, i32
  }
  func.func @transform_1(%arg0: i32) -> (i32, i32) {
    %c0_i32 = arith.constant 0 : i32
    %c0_i32_0 = arith.constant 0 : i32
    %c0_i32_1 = arith.constant 0 : i32
    return %c0_i32, %c0_i32_0 : i32, i32
  }
  func.func @transform_2(%arg0: i32) -> (i32, i32) {
    %c0_i32 = arith.constant 0 : i32
    %c0_i32_0 = arith.constant 0 : i32
    %c0_i32_1 = arith.constant 0 : i32
    return %c0_i32, %c0_i32_0 : i32, i32
  }
  func.func @transform_3(%arg0: i32) -> (i32, i32) {
    %c0_i32 = arith.constant 0 : i32
    %c0_i32_0 = arith.constant 0 : i32
    %c0_i32_1 = arith.constant 0 : i32
    return %c0_i32, %c0_i32_0 : i32, i32
  }
  func.func @transform_4(%arg0: i32) -> (i32, i32) {
    %c0_i32 = arith.constant 0 : i32
    %c0_i32_0 = arith.constant 0 : i32
    %c0_i32_1 = arith.constant 0 : i32
    return %c0_i32, %c0_i32_0 : i32, i32
  }
  func.func @transform_5(%arg0: i32) -> (i32, i32) {
    %c0_i32 = arith.constant 0 : i32
    %c0_i32_0 = arith.constant 0 : i32
    %c0_i32_1 = arith.constant 0 : i32
    return %c0_i32, %c0_i32_0 : i32, i32
  }
}

module attributes {stable_mosaic.version = 11 : i64} {
  func.func @_linear_kernel(%arg0: i32, %arg1: i32, %arg2: memref<8x256xf32, #tpu.memory_space<vmem>>, %arg3: memref<256x512xbf16, #tpu.memory_space<vmem>>, %arg4: memref<1x512xf32, #tpu.memory_space<vmem>>, %arg5: memref<8x512xf32, #tpu.memory_space<vmem>>) attributes {dimension_semantics = [#tpu.dimension_semantics<parallel>, #tpu.dimension_semantics<arbitrary>], iteration_bounds = array<i64: 2, 3>, scalar_prefetch = 0 : i64, scratch_operands = 0 : i64, tpu.core_type = #tpu.core_type<tc>, window_params = [{transform_indices = @transform_0, window_bounds = array<i64: 8, 256>}, {transform_indices = @transform_1, window_bounds = array<i64: 256, 512>}, {transform_indices = @transform_2, window_bounds = array<i64: 1, 512>}, {transform_indices = @transform_3, window_bounds = array<i64: 8, 512>}]} {
    %c0_i32 = arith.constant 0 : i32
    %0 = arith.cmpi eq, %arg1, %c0_i32 : i32
    %1 = arith.extui %0 : i1 to i32
    %c0_i32_0 = arith.constant 0 : i32
    %2 = arith.cmpi ne, %1, %c0_i32_0 : i32
    scf.if %2 {
      %cst_9 = arith.constant 0.000000e+00 : f32
      %13 = vector.broadcast %cst_9 : f32 to vector<8x512xf32>
      %c0_10 = arith.constant 0 : index
      %c0_11 = arith.constant 0 : index
      %14 = vector.load %arg5[%c0_10, %c0_11] : memref<8x512xf32, #tpu.memory_space<vmem>>, vector<8x512xf32>
      tpu.vector_store %arg5[%c0_10, %c0_11], %13 {strides = array<i32>} : memref<8x512xf32, #tpu.memory_space<vmem>>, vector<8x512xf32>,
    } else {
    }
    %c0 = arith.constant 0 : index
    %c0_1 = arith.constant 0 : index
    %3 = vector.load %arg5[%c0, %c0_1] : memref<8x512xf32, #tpu.memory_space<vmem>>, vector<8x512xf32>
    %c0_2 = arith.constant 0 : index
    %c0_3 = arith.constant 0 : index
    %4 = vector.load %arg2[%c0_2, %c0_3] : memref<8x256xf32, #tpu.memory_space<vmem>>, vector<8x256xf32>
    %5 = arith.truncf %4 : vector<8x256xf32> to vector<8x256xbf16>
    %c0_4 = arith.constant 0 : index
    %c0_5 = arith.constant 0 : index
    %6 = vector.load %arg3[%c0_4, %c0_5] : memref<256x512xbf16, #tpu.memory_space<vmem>>, vector<256x512xbf16>
    %cst = arith.constant dense<0.000000e+00> : vector<8x512xf32>
    %7 = tpu.matmul %5, %6, %cst {dimension_numbers = #tpu.dot_dimension_numbers<[1], [0], [0], [1], [0, 0, 1, 1], [], []>} : vector<8x256xbf16>, vector<256x512xbf16>, vector<8x512xf32> -> vector<8x512xf32>
    %8 = arith.addf %3, %7 : vector<8x512xf32>
    %c0_6 = arith.constant 0 : index
    %c0_7 = arith.constant 0 : index
    %9 = vector.load %arg5[%c0_6, %c0_7] : memref<8x512xf32, #tpu.memory_space<vmem>>, vector<8x512xf32>
    tpu.vector_store %arg5[%c0_6, %c0_7], %8 {strides = array<i32>} : memref<8x512xf32, #tpu.memory_space<vmem>>, vector<8x512xf32>,
    %c2_i32 = arith.constant 2 : i32
    %10 = arith.cmpi eq, %arg1, %c2_i32 : i32
    %11 = arith.extui %10 : i1 to i32
    %c0_i32_8 = arith.constant 0 : i32
    %12 = arith.cmpi ne, %11, %c0_i32_8 : i32
    scf.if %12 {
      %c0_9 = arith.constant 0 : index
      %c0_10 = arith.constant 0 : index
      %13 = vector.load %arg5[%c0_9, %c0_10] : memref<8x512xf32, #tpu.memory_space<vmem>>, vector<8x512xf32>
      %c0_11 = arith.constant 0 : index
      %c0_12 = arith.constant 0 : index
      %14 = vector.load %arg4[%c0_11, %c0_12] : memref<1x512xf32, #tpu.memory_space<vmem>>, vector<1x512xf32>
      %15 = vector.broadcast %14 : vector<1x512xf32> to vector<8x512xf32>
      %16 = arith.addf %13, %15 : vector<8x512xf32>
      %cst_13 = arith.constant 0.000000e+00 : f32
      %17 = vector.broadcast %cst_13 : f32 to vector<8x512xf32>
      %18 = arith.maximumf %16, %17 : vector<8x512xf32>
      %c0_14 = arith.constant 0 : index
      %c0_15 = arith.constant 0 : index
      %19 = vector.load %arg5[%c0_14, %c0_15] : memref<8x512xf32, #tpu.memory_space<vmem>>, vector<8x512xf32>
      tpu.vector_store %arg5[%c0_14, %c0_15], %18 {strides = array<i32>} : memref<8x512xf32, #tpu.memory_space<vmem>>, vector<8x512xf32>,
    } else {
    }
    return
  }
  func.func @transform_0(%arg0: i32, %arg1: i32) -> (i32, i32) {
    %c0_i32 = arith.constant 0 : i32
    %c0_i32_0 = arith.constant 0 : i32
    return %c0_i32, %arg1 : i32, i32
  }
  func.func @transform_1(%arg0: i32, %arg1: i32) -> (i32, i32) {
    %c0_i32 = arith.constant 0 : i32
    return %arg1, %arg0 : i32, i32
  }
  func.func @transform_2(%arg0: i32, %arg1: i32) -> (i32, i32) {
    %c0_i32 = arith.constant 0 : i32
    %c0_i32_0 = arith.constant 0 : i32
    return %c0_i32, %arg0 : i32, i32
  }
  func.func @transform_3(%arg0: i32, %arg1: i32) -> (i32, i32) {
    %c0_i32 = arith.constant 0 : i32
    %c0_i32_0 = arith.constant 0 : i32
    return %c0_i32, %arg0 : i32, i32
  }
}

</mosaic_0001>

<bundles_post_ra>
// kernel: svm_forward.2
= control target key start
LH: loop header
LB: loop body
LE: loop exit
PB: predicated region body
PF: predicated region fallthrough
CT: control target
= control target key end

     0   :  { %s1703_s0 = inlined_call_operand.vmem [shape: f32[8,768], index: 0, kind: input, shape index: {}]   ;;  %s1704_s1 = inlined_call_operand.hbm [shape: bf16[768,1024], index: 1, kind: input, shape index: {}]   ;;  %s1705_s2 = inlined_call_operand.hbm [shape: f32[1,1024], index: 2, kind: input, shape index: {}]   ;;  %s1706_s3 = inlined_call_operand.vmem [shape: f32[8,1024], index: 3, kind: output, shape index: {}]  }
   0x1   :  { %1709 = sst [smem:[#allocation10_spill]] %s1704_s1 }
   0x2   :  { %8 = vsyncpa [#allocation3], 0 }
   0x3   :  { %10 = vsyncpa [#allocation3 + $0x1], 0 }
   0x4   :  { %11 = vsyncpa [#allocation5], 0 }
   0x5   :  { %13 = vsyncpa [#allocation5 + $0x1], 0  ;;  %s1388_s12 = smov 0   ;;  %s1390_s13 = smov 0  }
   0x6   :  { %s1392_s14 = smov 0   ;;  %s1394_s15 = smov 0  }
   0x7   :  { %s1396_s16 = smov 0   ;;  %s1398_s17 = smov 0  }
   0x8   :  { %s1400_s18 = smov 0   ;;  %s1402_s19 = smov 0  }
   0x9   :  { %s1404_s20 = smov 0   ;;  %s1406_s21 = smov 0  }
   0xa   :  { %s1408_s22 = smov 0  }
   0xb LB: > { %s28_s23 = sadd.s32 1, %s1352_s20  ;;  %p73_p1 = scmp.ne.s32.totalorder %s1340_s17, %s1336_s16  ;;  %s1360_s22 = sphi %s1408_s22, %s19_s22   ;;  %s1356_s21 = sphi %s1406_s21, %s1734_s21   ;;  %s1352_s20 = sphi %s1404_s20, %s1733_s20   ;;  %s1348_s19 = sphi %s1402_s19, %s1732_s19   ;;  %s1344_s18 = sphi %s1400_s18, %s1731_s18   ;;  %s1340_s17 = sphi %s1398_s17, %s1730_s17   ;;  %s1336_s16 = sphi %s1396_s16, %s1729_s16   ;;  %s1332_s15 = sphi %s1394_s15, %s1728_s15   ;;  %s1328_s14 = sphi %s1392_s14, %s1727_s14   ;;  %s1324_s13 = sphi %s1390_s13, %s1726_s13   ;;  %s1320_s12 = sphi %s1388_s12, %s1725_s12  }
   0xc   : > { %p1445_p0 = scmp.ge.s32.totalorder %s28_s23, 3  ;;  %p74_p2 = scmp.eq.s32.totalorder %s1360_s22, 0 }
   0xd   : > { %p1021_p4 = scmp.lt.s32.totalorder %s1360_s22, 6  ;;  %s164_s27 = sand.u32 1, %s1340_s17  }
   0xe   : > { %s1736_s23 = smov (%p1445_p0, %s28_s23), 0  ;;  %p75_p3 = por %p74_p2, %p73_p1 }
   0xf   : > { %1711 = sst [smem:[#allocation8_spill]] %s1736_s23  ;;  %s925_s28 = sshll.u32 %s164_s27, 9 }
  0x10   : > { %s927_s29 = sshll.u32 %s1356_s21, 2  ;;  %s1008_s30 = sshll.u32 %s1352_s20, 8 }
  0x11   : > { %s168_s4 = scalar_lea.vmem [#allocation2], %s925_s28  ;;  %s175_s6 = sadd.s32 %s1008_s30, %s927_s29 }
  0x12   : > { %s178_s5 = sshll.u32 %s168_s4, 4  ;;  %s929_s7 = sshll.u32 %s175_s6, 6  ;;  %s179_s5 = int_to_ptr.vmem [resolvable:$true] %s178_s5 }
  0x13   : > { %p1466_p5 = pnand %p1021_p4, %p75_p3  ;;  %s1713_s1 = sld [smem:[#allocation10_spill]] }
  0x14   : > { %p933_p6 = scmp.ge.s32.totalorder %s1360_s22, 1  ;;  %s165_s24 = scalar_lea.sflag [#allocation3], %s164_s27 }
  0x15   : > { %p1212_p7 = pneg %p1466_p5  ;;  %s1223_s26 = scalar_lea.vmem %s179_s5, 8192 }
  0x16   : > { %p1224_p8 = scmp.ne.s32.totalorder %s179_s5, %s1223_s26  ;;  %s1362_s28 = smov [#allocation2]  }
  0x17   : > { %s1228_s29 = sshll.u32 %s1362_s28, 4  ;;  %s1229_s29 = int_to_ptr.vmem [resolvable:$false] %s1228_s29 }
  0x18   : > { %p1226_p9 = pnand %p1224_p8, %p1212_p7  ;;  %s1230_s30 = scalar_lea.vmem %s1229_s29, 16384 }
  0x19   : > { %s177_s11 = scalar_lea.hbm %s1713_s1, %s929_s7  ;;  %p1231_p11 = scmp.lt.s32.totalorder %s179_s5, %s1229_s29 }
  0x1a   : > { %p1227_p10 = pneg %p1226_p9  ;;  %p1232_p12 = scmp.lt.s32.totalorder %s1230_s30, %s1223_s26 }
  0x1c   : > { %p1233_p13 = por %p1232_p12, %p1231_p11 }
  0x1e   : > { %p1234_p1 = pnand %p1233_p13, %p1227_p10 }
  0x20   : > { %1237 = shalt.err (!%p1234_p1)
}
  0x21   : > { %s1363_s4 = smov 512   ;;  %s1364_s27 = smov 256  }
  0x22   : > { %s1365_s26 = smov 16   ;;  %p205_p3 = scmp.lt.s32.totalorder %s1360_s22, 7 }
  0x23   : > { %1017 = dma.hbm_to_vmem [thread:$0]  (!%p1466_p5), %s177_s11, 8192, %s179_s5, %s165_s24, %s1363_s4, %s1364_s27, %s1365_s26  }
  0x24   : > { %p1481_p7 = pnand %p933_p6, %p205_p3  ;;  %s921_s7 = sadd.s32 4294967295, %s1360_s22  }
  0x25   : > { %s31_s9 = sadd.s32 1, %s1356_s21  ;;  %p79_p8 = scmp.ne.s32.totalorder %s1336_s16, %s1332_s15 }
  0x26   : > { %s1738_s9 = smov (!%p1445_p0, %s31_s9), %s1356_s21  ;;  %p1492_p9 = scmp.eq.s32.totalorder %s921_s7, 0 }
  0x27   : > { %p33_p5 = scmp.ge.s32.totalorder %s1738_s9, 2  ;;  %s92_s24 = sadd.s32 1, %s1328_s14 }
  0x28   : > { %p1499_p6 = por %p1492_p9, %p79_p8  ;;  %p99_p10 = scmp.ne.s32.totalorder %s1328_s14, %s1324_s13 }
  0x29   : > { %s1740_s9 = smov (%p33_p5, %s1738_s9), 0  ;;  %p105_p11 = scmp.ne.s32.totalorder %s1324_s13, %s1320_s12 }
  0x2a   : > { %1717 = sst [smem:[#allocation9_spill]] %s1740_s9  ;;  %p1509_p0 = por %p99_p10, %p74_p2 }
  0x2b   : > { %s62_s25 = ssub.s32 %s1356_s21, %s1740_s9  ;;  %s188_s10 = sand.u32 1, %s1328_s14  }
  0x2c   : > { %s1719_s11 = ssub.s32 %s1352_s20, %s1736_s23  ;;  %p90_p12 = scmp.eq.s32.totalorder %s62_s25, 0 }
  0x2d   : > { %s63_s28 = sor.u32 %s62_s25, %s1719_s11  ;;  %p1523_p1 = por %p105_p11, %p1492_p9 }
  0x2e   : > { %p64_p13 = scmp.eq.s32.totalorder %s63_s28, 0  ;;  %s1721_s4 = sadd.s32 1, %s1340_s17 }
  0x2f   : > { %s1528_s30 = scalar_select %p90_p12, %s1328_s14, %s92_s24  }
  0x30   : > { %s1533_s27 = scalar_select %p64_p13, %s1340_s17, %s1721_s4  }
  0x31   : > { %s930_s26 = sshll.u32 %s188_s10, 2  ;;  %s1009_s7 = sshll.u32 %s1356_s21, 6 }
  0x32   : > { %s198_s9 = scalar_lea.hbm %s1705_s2, %s1009_s7  ;;  %s192_s23 = scalar_lea.vmem [#allocation4], %s930_s26 }
  0x33   : > { %s200_s11 = sshll.u32 %s192_s23, 4  ;;  %p1543_p2 = pnand %p1021_p4, %p1509_p0  ;;  %s201_s11 = int_to_ptr.vmem [resolvable:$true] %s200_s11 }
  0x34   : > { %s189_s24 = scalar_lea.sflag [#allocation5], %s188_s10  ;;  %s1251_s25 = scalar_lea.vmem %s201_s11, 64 }
  0x35   : > { %p1240_p3 = pneg %p1543_p2  ;;  %p1252_p8 = scmp.ne.s32.totalorder %s201_s11, %s1251_s25 }
  0x36   : > { %s1366_s28 = smov [#allocation4]  }
  0x37   : > { %p1254_p9 = pnand %p1252_p8, %p1240_p3  ;;  %s1256_s1 = sshll.u32 %s1366_s28, 4  ;;  %s1257_s1 = int_to_ptr.vmem [resolvable:$false] %s1256_s1 }
  0x38   : > { %s1258_s4 = scalar_lea.vmem %s1257_s1, 128  ;;  %p1259_p10 = scmp.lt.s32.totalorder %s201_s11, %s1257_s1 }
  0x39   : > { %p1255_p5 = pneg %p1254_p9  ;;  %p1260_p11 = scmp.lt.s32.totalorder %s1258_s4, %s1251_s25 }
  0x3b   : > { %p1261_p12 = por %p1260_p11, %p1259_p10 }
  0x3d   : > { %p1262_p13 = pnand %p1261_p12, %p1255_p5 }
  0x3f   : > { %1265 = shalt.err (!%p1262_p13)
}
  0x40   : > { %1020 = dma.hbm_to_vmem [thread:$0]  (!%p1543_p2), %s198_s9, 64, %s201_s11, %s189_s24  }
  0x41   : > { %209 = sbr.rel (%p1481_p7) target bundleno = 367 (0x16f), region = 32  ;;  %s211_s23 = sand.u32 (!%p1481_p7), 1, %s1336_s16  }
  0x42   : > { %s934_s15 = sshll.u32 (!%p1481_p7), %s211_s23, 9  ;;  %s212_s10 = scalar_lea.sflag (!%p1481_p7), [#allocation3], %s211_s23 }
  0x43   : > { %s1554_s26 = scalar_lea.vmem (!%p1481_p7), [#allocation2], %s934_s15 }
  0x46   : > { %1311 = dma.done.wait (%p1499_p6), %s212_s10, 8192  }
  0x47   : > { %1313 = vsyncadd (%p1499_p6), %s212_s10, 4294959104  ;;  %s220_s7 = sand.u32 1, %s1324_s13  }
  0x48   : > { %s1561_s12 = sshll.u32 %s220_s7, 2  ;;  %s221_s6 = scalar_lea.sflag [#allocation5], %s220_s7 }
  0x49   : > { %s224_s9 = scalar_lea.vmem [#allocation4], %s1561_s12 }
  0x4a   : > { %1315 = dma.done.wait (%p1523_p1), %s221_s6, 64  }
  0x4b   : > { %1317 = vsyncadd (%p1523_p1), %s221_s6, 4294967232  ;;  %s936_s11 = sshll.u32 %s1344_s18, 1  ;;  %s938_s8 = sshll.u32 %s1348_s19, 2 }
  0x4c   : > { %p258_p4 = scmp.lt.s32.totalorder %s936_s11, 5  ;;  %p267_p7 = scmp.lt.s32.totalorder %s938_s8, 7 }
  0x4d   : > { %p940_p6 = scmp.ne.s32.totalorder %s1344_s18, 0 }
  0x4e   : > { %s1742_s11 = smov (!%p258_p4, %s936_s11), 5  ;;  %s1744_s8 = smov (!%p267_p7, %s938_s8), 7 }
  0x4f   : > { %s937_s5 = sshll.u32 %s1742_s11, 3  ;;  %s939_s1 = sshll.u32 %s1744_s8, 3 }
  0x50   : > { %s1573_s28 = scalar_lea.vmem %s1703_s0, %s937_s5  ;;  %s1578_s29 = scalar_lea.vmem %s1706_s3, %s939_s1 }
  0x51   : > { %275 = sbr.rel (%p940_p6) target bundleno = 89 (0x59), region = 44 }
  0x56   : > { %v1367_v0 = vmov 0.0  }
  0x57   : > { %276 = vst [vmem:[%s1578_s29] sm:$0xff] %v1367_v0  ;;  %277 = vst [vmem:[%s1578_s29 + $0x8] sm:$0xff] %v1367_v0 }
  0x58   : > { %278 = vst [vmem:[%s1578_s29 + $0x10] sm:$0xff] %v1367_v0  ;;  %279 = vst [vmem:[%s1578_s29 + $0x18] sm:$0xff] %v1367_v0 }
  0x59 PF: > { %v1114_v1 = vld [vmem:[%s1554_s26 + $0xe4] ss:$16 sps:$4 sm:$0xff]   ;;  %v1116_v2 = vld [vmem:[%s1554_s26 + $0xec] ss:$16 sps:$4 sm:$0xff]   ;;  %v1118_v3 = vld [vmem:[%s1554_s26 + $0xe0] ss:$16 sps:$4 sm:$0xff]  }
  0x5a   : > { %672 = vmatprep.subr.bf16.mxu0 %v1114_v1  ;;  %v1119_v4 = vld [vmem:[%s1554_s26 + $0xe8] ss:$16 sps:$4 sm:$0xff]   ;;  %713 = vmatprep.subr.bf16.mxu1 %v1116_v2  ;;  %v1120_v5 = vld [vmem:[%s1554_s26 + $0xc4] ss:$16 sps:$4 sm:$0xff]   ;;  %v1122_v6 = vld [vmem:[%s1554_s26 + $0xcc] ss:$16 sps:$4 sm:$0xff]  }
  0x5b   : > { %673 = vmatpush1.bf16.msra.mxu0 %v1118_v3  ;;  %714 = vmatpush1.bf16.msra.mxu1 %v1119_v4  ;;  %v1124_v7 = vld [vmem:[%s1554_s26 + $0xc0] ss:$16 sps:$4 sm:$0xff]   ;;  %v1125_v8 = vld [vmem:[%s1554_s26 + $0xc8] ss:$16 sps:$4 sm:$0xff]   ;;  %v1126_v9 = vld [vmem:[%s1554_s26 + $0xa4] ss:$16 sps:$4 sm:$0xff]  }
  0x5c   : > { %674 = vmatprep.subr.bf16.mxu0 %v1120_v5  ;;  %715 = vmatprep.subr.bf16.mxu1 %v1122_v6  ;;  %v1128_v10 = vld [vmem:[%s1554_s26 + $0xac] ss:$16 sps:$4 sm:$0xff]   ;;  %v1130_v11 = vld [vmem:[%s1554_s26 + $0xa0] ss:$16 sps:$4 sm:$0xff]   ;;  %v1131_v12 = vld [vmem:[%s1554_s26 + $0xa8] ss:$16 sps:$4 sm:$0xff]  }
  0x5d   : > { %v1132_v13 = vld [vmem:[%s1554_s26 + $0x84] ss:$16 sps:$4 sm:$0xff]   ;;  %v1134_v14 = vld [vmem:[%s1554_s26 + $0x8c] ss:$16 sps:$4 sm:$0xff]   ;;  %v1136_v15 = vld [vmem:[%s1554_s26 + $0x80] ss:$16 sps:$4 sm:$0xff]  }
  0x5e   : > { %v1137_v16 = vld [vmem:[%s1554_s26 + $0x88] ss:$16 sps:$4 sm:$0xff]   ;;  %v1138_v17 = vld [vmem:[%s1554_s26 + $0x64] ss:$16 sps:$4 sm:$0xff]   ;;  %v1140_v18 = vld [vmem:[%s1554_s26 + $0x6c] ss:$16 sps:$4 sm:$0xff]  }
  0x5f   : > { %675 = vmatpush1.bf16.msra.mxu0 %v1124_v7  ;;  %716 = vmatpush1.bf16.msra.mxu1 %v1125_v8  ;;  %v1142_v19 = vld [vmem:[%s1554_s26 + $0x60] ss:$16 sps:$4 sm:$0xff]   ;;  %v1143_v20 = vld [vmem:[%s1554_s26 + $0x68] ss:$16 sps:$4 sm:$0xff]   ;;  %v1144_v21 = vld [vmem:[%s1554_s26 + $0x44] ss:$16 sps:$4 sm:$0xff]  }
  0x60   : > { %676 = vmatprep.subr.bf16.mxu0 %v1126_v9  ;;  %717 = vmatprep.subr.bf16.mxu1 %v1128_v10  ;;  %v1146_v22 = vld [vmem:[%s1554_s26 + $0x4c] ss:$16 sps:$4 sm:$0xff]   ;;  %v1148_v23 = vld [vmem:[%s1554_s26 + $0x40] ss:$16 sps:$4 sm:$0xff]   ;;  %v1149_v24 = vld [vmem:[%s1554_s26 + $0x48] ss:$16 sps:$4 sm:$0xff]  }
  0x61   : > { %v1150_v25 = vld [vmem:[%s1554_s26 + $0x24] ss:$16 sps:$4 sm:$0xff]   ;;  %v1152_v26 = vld [vmem:[%s1554_s26 + $0x2c] ss:$16 sps:$4 sm:$0xff]   ;;  %v1154_v27 = vld [vmem:[%s1554_s26 + $0x20] ss:$16 sps:$4 sm:$0xff]  }
  0x62   : > { %v1155_v28 = vld [vmem:[%s1554_s26 + $0x28] ss:$16 sps:$4 sm:$0xff]   ;;  %v1156_v29 = vld [vmem:[%s1554_s26 + $0x4] ss:$16 sps:$4 sm:$0xff]   ;;  %v1158_v30 = vld [vmem:[%s1554_s26 + $0xc] ss:$16 sps:$4 sm:$0xff]  }
  0x63   : > { %677 = vmatpush1.bf16.msra.mxu0 %v1130_v11  ;;  %718 = vmatpush1.bf16.msra.mxu1 %v1131_v12  ;;  %v1160_v31 = vld [vmem:[%s1554_s26] ss:$16 sps:$4 sm:$0xff]   ;;  %v1161_v32 = vld [vmem:[%s1554_s26 + $0x8] ss:$16 sps:$4 sm:$0xff]   ;;  %v1162_v33 = vld [vmem:[%s1554_s26 + $0x1e4] ss:$16 sps:$4 sm:$0xff]  }
  0x64   : > { %678 = vmatprep.subr.bf16.mxu0 %v1132_v13  ;;  %719 = vmatprep.subr.bf16.mxu1 %v1134_v14  ;;  %v1164_v34 = vld [vmem:[%s1554_s26 + $0x1ec] ss:$16 sps:$4 sm:$0xff]   ;;  %v1166_v35 = vld [vmem:[%s1554_s26 + $0x1e0] ss:$16 sps:$4 sm:$0xff]   ;;  %v1167_v36 = vld [vmem:[%s1554_s26 + $0x1e8] ss:$16 sps:$4 sm:$0xff]  }
  0x65   : > { %v1168_v37 = vld [vmem:[%s1554_s26 + $0x1c4] ss:$16 sps:$4 sm:$0xff]   ;;  %v1170_v38 = vld [vmem:[%s1554_s26 + $0x1cc] ss:$16 sps:$4 sm:$0xff]   ;;  %v1172_v39 = vld [vmem:[%s1554_s26 + $0x1c0] ss:$16 sps:$4 sm:$0xff]  }
  0x66   : > { %v1173_v40 = vld [vmem:[%s1554_s26 + $0x1c8] ss:$16 sps:$4 sm:$0xff]   ;;  %v1174_v41 = vld [vmem:[%s1554_s26 + $0x1a4] ss:$16 sps:$4 sm:$0xff]   ;;  %v1176_v42 = vld [vmem:[%s1554_s26 + $0x1ac] ss:$16 sps:$4 sm:$0xff]  }
  0x67   : > { %679 = vmatpush1.bf16.msra.mxu0 %v1136_v15  ;;  %720 = vmatpush1.bf16.msra.mxu1 %v1137_v16  ;;  %v1178_v43 = vld [vmem:[%s1554_s26 + $0x1a0] ss:$16 sps:$4 sm:$0xff]   ;;  %v1179_v44 = vld [vmem:[%s1554_s26 + $0x1a8] ss:$16 sps:$4 sm:$0xff]   ;;  %v1180_v45 = vld [vmem:[%s1554_s26 + $0x184] ss:$16 sps:$4 sm:$0xff]  }
  0x68   : > { %680 = vmatprep.subr.bf16.mxu0 %v1138_v17  ;;  %721 = vmatprep.subr.bf16.mxu1 %v1140_v18  ;;  %v1182_v46 = vld [vmem:[%s1554_s26 + $0x18c] ss:$16 sps:$4 sm:$0xff]   ;;  %v1184_v49 = vld [vmem:[%s1554_s26 + $0x180] ss:$16 sps:$4 sm:$0xff]   ;;  %v1185_v50 = vld [vmem:[%s1554_s26 + $0x188] ss:$16 sps:$4 sm:$0xff]  }
  0x69   : > { %v285_v47 = vld [vmem:[%s1573_s28 + $0x8] sm:$0xff]  ;;  %v1186_v51 = vld [vmem:[%s1554_s26 + $0x164] ss:$16 sps:$4 sm:$0xff]   ;;  %v1190_v53 = vld [vmem:[%s1554_s26 + $0x160] ss:$16 sps:$4 sm:$0xff]   ;;  %p1005_p0 = scmp.ne.s32.totalorder %s1344_s18, 2 }
  0x6a   : > { %v287_v48 = vpack.c.bf16 %v285_v47, %v285_v47  ;;  %v1188_v52 = vld [vmem:[%s1554_s26 + $0x16c] ss:$16 sps:$4 sm:$0xff]   ;;  %v1191_v54 = vld [vmem:[%s1554_s26 + $0x168] ss:$16 sps:$4 sm:$0xff]   ;;  %v1192_v55 = vld [vmem:[%s1554_s26 + $0x144] ss:$16 sps:$4 sm:$0xff]  }
  0x6b   : > { %681 = vmatpush1.bf16.msra.mxu0 %v1142_v19  ;;  %722 = vmatpush1.bf16.msra.mxu1 %v1143_v20  ;;  %v1194_v56 = vld [vmem:[%s1554_s26 + $0x14c] ss:$16 sps:$4 sm:$0xff]   ;;  %v1196_v57 = vld [vmem:[%s1554_s26 + $0x140] ss:$16 sps:$4 sm:$0xff]   ;;  %v1197_v58 = vld [vmem:[%s1554_s26 + $0x148] ss:$16 sps:$4 sm:$0xff]  }
  0x6c   : > { %682 = vmatprep.subr.bf16.mxu0 %v1144_v21  ;;  %723 = vmatprep.subr.bf16.mxu1 %v1146_v22  ;;  %v1198_v59 = vld [vmem:[%s1554_s26 + $0x124] ss:$16 sps:$4 sm:$0xff]   ;;  %v1200_v60 = vld [vmem:[%s1554_s26 + $0x12c] ss:$16 sps:$4 sm:$0xff]   ;;  %v1202_v61 = vld [vmem:[%s1554_s26 + $0x120] ss:$16 sps:$4 sm:$0xff]  }
  0x6d   : > { %704 = vmatprep.mubr.bf16.mxu0 %v287_v48  ;;  %745 = vmatprep.mubr.bf16.mxu1 %v287_v48  ;;  %v1203_v62 = vld [vmem:[%s1554_s26 + $0x128] ss:$16 sps:$4 sm:$0xff]   ;;  %v1204_v63 = vld [vmem:[%s1554_s26 + $0x104] ss:$16 sps:$4 sm:$0xff]   ;;  %v1206_v0 = vld [vmem:[%s1554_s26 + $0x10c] ss:$16 sps:$4 sm:$0xff]  }
  0x6e   : > { %v1208_v1 = vld [vmem:[%s1554_s26 + $0x100] ss:$16 sps:$4 sm:$0xff]   ;;  %v1209_v2 = vld [vmem:[%s1554_s26 + $0x108] ss:$16 sps:$4 sm:$0xff]  }
  0x6f   : > { %683 = vmatpush1.bf16.msra.mxu0 %v1148_v23  ;;  %724 = vmatpush1.bf16.msra.mxu1 %v1149_v24  ;;  %v284_v3 = vld [vmem:[%s1573_s28] sm:$0xff]  ;;  %v282_v7 = vld [vmem:[%s1578_s29 + $0x10] sm:$0xff]  ;;  %v281_v9 = vld [vmem:[%s1578_s29 + $0x8] sm:$0xff] }
  0x70   : > { %684 = vmatprep.subr.bf16.mxu0 %v1150_v25  ;;  %725 = vmatprep.subr.bf16.mxu1 %v1152_v26  ;;  %v286_v4 = vpack.c.bf16 %v284_v3, %v284_v3  ;;  %v280_v5 = vld [vmem:[%s1578_s29] sm:$0xff]  ;;  %v283_v10 = vld [vmem:[%s1578_s29 + $0x18] sm:$0xff] }
  0x73   : > { %685 = vmatpush1.bf16.msra.mxu0 %v1154_v27  ;;  %726 = vmatpush1.bf16.msra.mxu1 %v1155_v28 }
  0x74   : > { %686 = vmatprep.subr.bf16.mxu0 %v1156_v29  ;;  %727 = vmatprep.subr.bf16.mxu1 %v1158_v30 }
  0x77   : > { %687 = vmatpush1.bf16.msra.mxu0 %v1160_v31  ;;  %728 = vmatpush1.bf16.msra.mxu1 %v1161_v32 }
  0x78   : > { %688 = vmatprep.subr.bf16.mxu0 %v1162_v33  ;;  %729 = vmatprep.subr.bf16.mxu1 %v1164_v34 }
  0x7b   : > { %689 = vmatpush2.bf16.msra.mxu0 %v1166_v35  ;;  %730 = vmatpush2.bf16.msra.mxu1 %v1167_v36 }
  0x7c   : > { %690 = vmatprep.subr.bf16.mxu0 %v1168_v37  ;;  %731 = vmatprep.subr.bf16.mxu1 %v1170_v38 }
  0x7f   : > { %691 = vmatpush2.bf16.msra.mxu0 %v1172_v39  ;;  %732 = vmatpush2.bf16.msra.mxu1 %v1173_v40 }
  0x80   : > { %692 = vmatprep.subr.bf16.mxu0 %v1174_v41  ;;  %733 = vmatprep.subr.bf16.mxu1 %v1176_v42 }
  0x83   : > { %693 = vmatpush2.bf16.msra.mxu0 %v1178_v43  ;;  %734 = vmatpush2.bf16.msra.mxu1 %v1179_v44 }
  0x84   : > { %694 = vmatprep.subr.bf16.mxu0 %v1180_v45  ;;  %735 = vmatprep.subr.bf16.mxu1 %v1182_v46 }
  0x87   : > { %695 = vmatpush2.bf16.msra.mxu0 %v1184_v49  ;;  %736 = vmatpush2.bf16.msra.mxu1 %v1185_v50 }
  0x88   : > { %696 = vmatprep.subr.bf16.mxu0 %v1186_v51  ;;  %737 = vmatprep.subr.bf16.mxu1 %v1188_v52 }
  0x8b   : > { %697 = vmatpush2.bf16.msra.mxu0 %v1190_v53  ;;  %738 = vmatpush2.bf16.msra.mxu1 %v1191_v54 }
  0x8c   : > { %698 = vmatprep.subr.bf16.mxu0 %v1192_v55  ;;  %739 = vmatprep.subr.bf16.mxu1 %v1194_v56 }
  0x8f   : > { %699 = vmatpush2.bf16.msra.mxu0 %v1196_v57  ;;  %740 = vmatpush2.bf16.msra.mxu1 %v1197_v58 }
  0x90   : > { %700 = vmatprep.subr.bf16.mxu0 %v1198_v59  ;;  %741 = vmatprep.subr.bf16.mxu1 %v1200_v60 }
  0x93   : > { %701 = vmatpush2.bf16.msra.mxu0 %v1202_v61  ;;  %742 = vmatpush2.bf16.msra.mxu1 %v1203_v62 }
  0x94   : > { %702 = vmatprep.subr.bf16.mxu0 %v1204_v63  ;;  %743 = vmatprep.subr.bf16.mxu1 %v1206_v0 }
  0x97   : > { %703 = vmatpush2.bf16.msra.mxu0 %v1208_v1  ;;  %744 = vmatpush2.bf16.msra.mxu1 %v1209_v2 }
  0x9a   : > { %705 = vmatmul.mubr.bf16.vlgmr.msra.gmra.mxu0 %v286_v4  ;;  %746 = vmatmul.mubr.bf16.vlgmr.msra.gmra.mxu1 %v286_v4 }
 0x15a   : > { %v706_v6 = vpop.f32.mrf.mxu0  ;;  %v747_v8 = vpop.f32.mrf.mxu1 }
 0x15b   : > { %v754_v11 = vadd.f32 %v706_v6, %v280_v5  ;;  %v756_v15 = vadd.f32 %v747_v8, %v282_v7 }
 0x15c   : > { %v708_v12 = vpop.f32.mrf.mxu0  ;;  %v749_v13 = vpop.f32.mrf.mxu1  ;;  %765 = sbr.rel (%p1005_p0) target bundleno = 367 (0x16f), region = 48 }
 0x15d   : > { %v755_v14 = vadd.f32 %v708_v12, %v281_v9  ;;  %758 = vst [vmem:[%s1578_s29] sm:$0xff] %v754_v11  ;;  %v757_v18 = vadd.f32 %v749_v13, %v283_v10  ;;  %760 = vst [vmem:[%s1578_s29 + $0x10] sm:$0xff] %v756_v15 }
 0x15e   : > { %v710_v16 = vpop.f32.mrf.mxu0  ;;  %v751_v17 = vpop.f32.mrf.mxu1 }
 0x15f   : > { %759 = vst [vmem:[%s1578_s29 + $0x8] sm:$0xff] %v755_v14  ;;  %761 = vst [vmem:[%s1578_s29 + $0x18] sm:$0xff] %v757_v18 }
 0x160   : > { %v711_v19 = vpop.f32.mrf.mxu0  ;;  %v752_v20 = vpop.f32.mrf.mxu1 }
 0x161   : > { %v772_v21 = vlaneseq  ;;  %v770_v23 = vld [vmem:[%s224_s9] sm:$0xf] }
 0x163   : > { %v773_v22 = vshrl.u32 %v772_v21, 7 }
 0x164   : > { %v766_v24 = vld [vmem:[%s1578_s29] sm:$0xff]  ;;  %v768_v30 = vld [vmem:[%s1578_s29 + $0x10] sm:$0xff] }
 0x165   : > { %v774_v25 = vsub.s32 0, %v773_v22  ;;  %v778_v26 = vsub.s32 1, %v773_v22  ;;  %v782_v27 = vsub.s32 2, %v773_v22  ;;  %v786_v28 = vsub.s32 3, %v773_v22 }
 0x166   : > { %v767_v29 = vld [vmem:[%s1578_s29 + $0x8] sm:$0xff]  ;;  %v769_v31 = vld [vmem:[%s1578_s29 + $0x18] sm:$0xff] }
 0x167   : > { %v775_v32 = vrot.slane %v770_v23, %v774_v25  ;;  %v779_v33 = vrot.slane %v770_v23, %v778_v26  ;;  %v783_v34 = vrot.slane %v770_v23, %v782_v27  ;;  %v787_v35 = vrot.slane %v770_v23, %v786_v28 }
 0x169   : > { %v792_v36 = vadd.f32 %v775_v32, %v766_v24  ;;  %v793_v37 = vadd.f32 %v779_v33, %v767_v29  ;;  %v794_v38 = vadd.f32 %v783_v34, %v768_v30  ;;  %v795_v39 = vadd.f32 %v787_v35, %v769_v31 }
 0x16b   : > { %v796_v40 = vmax.f32 %v792_v36, 0.0  ;;  %v797_v41 = vmax.f32 %v793_v37, 0.0  ;;  %v798_v42 = vmax.f32 %v794_v38, 0.0  ;;  %v799_v43 = vmax.f32 %v795_v39, 0.0 }
 0x16d   : > { %800 = vst [vmem:[%s1578_s29] sm:$0xff] %v796_v40  ;;  %801 = vst [vmem:[%s1578_s29 + $0x8] sm:$0xff] %v797_v41 }
 0x16e   : > { %802 = vst [vmem:[%s1578_s29 + $0x10] sm:$0xff] %v798_v42  ;;  %803 = vst [vmem:[%s1578_s29 + $0x18] sm:$0xff] %v799_v43 }
 0x16f PF: > { %s19_s22 = sadd.s32 1, %s1360_s22   ;;  %s1723_s10 = sld [smem:[#allocation8_spill]] }
 0x170   : > { %p16_p1 = scmp.ge.s32.totalorder %s19_s22, 8   ;;  %s1724_s26 = sld [smem:[#allocation9_spill]] }
 0x171   : > { %s1725_s12 = smov %s1324_s13  ;;  %s1726_s13 = smov %s1328_s14 }
 0x172   : > { %s1727_s14 = smov %s1528_s30  ;;  %s1728_s15 = smov %s1336_s16 }
 0x173   : > { %s1729_s16 = smov %s1340_s17  ;;  %s1730_s17 = smov %s1533_s27 }
 0x174   : > { %s1731_s18 = smov %s1352_s20  ;;  %s1732_s19 = smov %s1356_s21 }
 0x175   : > { %s1733_s20 = smov %s1723_s10  ;;  %18 = sbr.rel (!%p16_p1) target bundleno = 11 (0xb), region = 96 }
 0x176   : > { %s1734_s21 = smov %s1724_s26 }
 0x17a   :  { %826 = vsyncpa [#allocation3], 1 }
 0x17b   :  { %828 = vsyncpa [#allocation3 + $0x1], 1 }
 0x17c   :  { %829 = vsyncpa [#allocation5], 1 }
 0x17d   :  { %831 = vsyncpa [#allocation5 + $0x1], 1 }

// kernel: svm_forward.3
= control target key start
LH: loop header
LB: loop body
LE: loop exit
PB: predicated region body
PF: predicated region fallthrough
CT: control target
= control target key end

     0   :  { %s1427_s0 = inlined_call_operand.vmem [shape: f32[8,1024], index: 0, kind: input, shape index: {}]   ;;  %s1428_s1 = inlined_call_operand.vmem [shape: bf16[1024,128], index: 1, kind: input, shape index: {}]   ;;  %s1429_s2 = inlined_call_operand.vmem [shape: f32[1,128], index: 2, kind: input, shape index: {}]   ;;  %s1430_s3 = inlined_call_operand.vmem [shape: f32[128,128], index: 3, kind: input, shape index: {}]   ;;  %s1431_s4 = inlined_call_operand.vmem [shape: f32[1,128], index: 4, kind: input, shape index: {}]   ;;  %s1432_s5 = inlined_call_operand.hbm [shape: f32[8,128], index: 5, kind: output, shape index: {}]  }
   0x1   :  { %v1035_v0 = vld [vmem:[%s1428_s1 + $0x78] sm:$0xff]   ;;  %v1039_v4 = vld [vmem:[%s1428_s1 + $0x70] sm:$0xff]   ;;  %v1043_v8 = vld [vmem:[%s1428_s1 + $0x68] sm:$0xff]  }
   0x2   :  { %v1036_v1 = vld [vmem:[%s1428_s1 + $0xf8] sm:$0xff]   ;;  %892 = vmatprep.subr.bf16.mxu0 %v1035_v0  ;;  %v1040_v5 = vld [vmem:[%s1428_s1 + $0xf0] sm:$0xff]   ;;  %v1044_v9 = vld [vmem:[%s1428_s1 + $0xe8] sm:$0xff]  }
   0x3   :  { %v1037_v2 = vld [vmem:[%s1428_s1 + $0x38] sm:$0xff]   ;;  %914 = vmatprep.subr.bf16.mxu1 %v1036_v1  ;;  %v1041_v6 = vld [vmem:[%s1428_s1 + $0x30] sm:$0xff]   ;;  %v1045_v10 = vld [vmem:[%s1428_s1 + $0x28] sm:$0xff]  }
   0x4   :  { %v1038_v3 = vld [vmem:[%s1428_s1 + $0xb8] sm:$0xff]   ;;  %893 = vmatpush3.bf16.msra.mxu0 %v1037_v2  ;;  %v1042_v7 = vld [vmem:[%s1428_s1 + $0xb0] sm:$0xff]   ;;  %v1046_v11 = vld [vmem:[%s1428_s1 + $0xa8] sm:$0xff]  }
   0x5   :  { %915 = vmatpush3.bf16.msra.mxu1 %v1038_v3  ;;  %894 = vmatprep.subr.bf16.mxu0 %v1039_v4  ;;  %v1047_v12 = vld [vmem:[%s1428_s1 + $0x60] sm:$0xff]   ;;  %v1051_v16 = vld [vmem:[%s1428_s1 + $0x58] sm:$0xff]   ;;  %v1055_v20 = vld [vmem:[%s1428_s1 + $0x50] sm:$0xff]  }
   0x6   :  { %916 = vmatprep.subr.bf16.mxu1 %v1040_v5  ;;  %v1048_v13 = vld [vmem:[%s1428_s1 + $0xe0] sm:$0xff]   ;;  %v1052_v17 = vld [vmem:[%s1428_s1 + $0xd8] sm:$0xff]   ;;  %v1056_v21 = vld [vmem:[%s1428_s1 + $0xd0] sm:$0xff]  }
   0x7   :  { %v1049_v14 = vld [vmem:[%s1428_s1 + $0x20] sm:$0xff]   ;;  %v1053_v18 = vld [vmem:[%s1428_s1 + $0x18] sm:$0xff]   ;;  %v1057_v22 = vld [vmem:[%s1428_s1 + $0x10] sm:$0xff]  }
   0x8   :  { %895 = vmatpush3.bf16.msra.mxu0 %v1041_v6  ;;  %v1050_v15 = vld [vmem:[%s1428_s1 + $0xa0] sm:$0xff]   ;;  %v1054_v19 = vld [vmem:[%s1428_s1 + $0x98] sm:$0xff]   ;;  %v1058_v23 = vld [vmem:[%s1428_s1 + $0x90] sm:$0xff]  }
   0x9   :  { %917 = vmatpush3.bf16.msra.mxu1 %v1042_v7  ;;  %896 = vmatprep.subr.bf16.mxu0 %v1043_v8  ;;  %v1059_v24 = vld [vmem:[%s1428_s1 + $0x48] sm:$0xff]   ;;  %v1063_v28 = vld [vmem:[%s1428_s1 + $0x40] sm:$0xff]   ;;  %v25_v33 = vld [vmem:[%s1427_s0 + $0x18] sm:$0xff] }
   0xa   :  { %918 = vmatprep.subr.bf16.mxu1 %v1044_v9  ;;  %v1060_v25 = vld [vmem:[%s1428_s1 + $0xc8] sm:$0xff]   ;;  %v1064_v29 = vld [vmem:[%s1428_s1 + $0xc0] sm:$0xff]   ;;  %v33_v36 = vpack.c.bf16 %v25_v33, %v25_v33  ;;  %v24_v38 = vld [vmem:[%s1427_s0 + $0x10] sm:$0xff] }
   0xb   :  { %v1061_v26 = vld [vmem:[%s1428_s1 + $0x8] sm:$0xff]   ;;  %v1065_v30 = vld [vmem:[%s1428_s1] sm:$0xff]   ;;  %v32_v39 = vpack.c.bf16 %v24_v38, %v24_v38  ;;  %v1067_v40 = vld [vmem:[%s1428_s1 + $0x178] sm:$0xff]  }
   0xc   :  { %897 = vmatpush3.bf16.msra.mxu0 %v1045_v10  ;;  %v1062_v27 = vld [vmem:[%s1428_s1 + $0x88] sm:$0xff]   ;;  %v1066_v31 = vld [vmem:[%s1428_s1 + $0x80] sm:$0xff]   ;;  %629 = vmatprep.mubr.bf16.mxu1 %v33_v36  ;;  %v1068_v41 = vld [vmem:[%s1428_s1 + $0x1f8] sm:$0xff]  }
   0xd   :  { %919 = vmatpush3.bf16.msra.mxu1 %v1046_v11  ;;  %898 = vmatprep.subr.bf16.mxu0 %v1047_v12  ;;  %v23_v32 = vld [vmem:[%s1427_s0 + $0x8] sm:$0xff]  ;;  %v22_v34 = vld [vmem:[%s1427_s0] sm:$0xff]  ;;  %v1069_v42 = vld [vmem:[%s1428_s1 + $0x138] sm:$0xff]  }
   0xe   :  { %920 = vmatprep.subr.bf16.mxu1 %v1048_v13  ;;  %v31_v35 = vpack.c.bf16 %v23_v32, %v23_v32  ;;  %v30_v37 = vpack.c.bf16 %v22_v34, %v22_v34  ;;  %v1070_v43 = vld [vmem:[%s1428_s1 + $0x1b8] sm:$0xff]   ;;  %v1071_v44 = vld [vmem:[%s1428_s1 + $0x170] sm:$0xff]   ;;  %v1075_v48 = vld [vmem:[%s1428_s1 + $0x168] sm:$0xff]  }
   0xf   :  { %v1072_v45 = vld [vmem:[%s1428_s1 + $0x1f0] sm:$0xff]   ;;  %v1076_v49 = vld [vmem:[%s1428_s1 + $0x1e8] sm:$0xff]   ;;  %v1079_v52 = vld [vmem:[%s1428_s1 + $0x160] sm:$0xff]  }
  0x10   :  { %899 = vmatpush3.bf16.msra.mxu0 %v1049_v14  ;;  %589 = vmatprep.mubr.bf16.mxu0 %v31_v35  ;;  %v1073_v46 = vld [vmem:[%s1428_s1 + $0x130] sm:$0xff]   ;;  %v1077_v50 = vld [vmem:[%s1428_s1 + $0x128] sm:$0xff]   ;;  %v1080_v53 = vld [vmem:[%s1428_s1 + $0x1e0] sm:$0xff]  }
  0x11   :  { %921 = vmatpush3.bf16.msra.mxu1 %v1050_v15  ;;  %900 = vmatprep.subr.bf16.mxu0 %v1051_v16  ;;  %v1074_v47 = vld [vmem:[%s1428_s1 + $0x1b0] sm:$0xff]   ;;  %v1078_v51 = vld [vmem:[%s1428_s1 + $0x1a8] sm:$0xff]   ;;  %v1081_v54 = vld [vmem:[%s1428_s1 + $0x120] sm:$0xff]  }
  0x12   :  { %922 = vmatprep.subr.bf16.mxu1 %v1052_v17  ;;  %v1082_v55 = vld [vmem:[%s1428_s1 + $0x1a0] sm:$0xff]   ;;  %v1083_v56 = vld [vmem:[%s1428_s1 + $0x158] sm:$0xff]   ;;  %v1087_v60 = vld [vmem:[%s1428_s1 + $0x150] sm:$0xff]  }
  0x13   :  { %v1084_v57 = vld [vmem:[%s1428_s1 + $0x1d8] sm:$0xff]   ;;  %v1088_v61 = vld [vmem:[%s1428_s1 + $0x1d0] sm:$0xff]   ;;  %v1091_v0 = vld [vmem:[%s1428_s1 + $0x148] sm:$0xff]  }
  0x14   :  { %901 = vmatpush3.bf16.msra.mxu0 %v1053_v18  ;;  %v1085_v58 = vld [vmem:[%s1428_s1 + $0x118] sm:$0xff]   ;;  %v1089_v62 = vld [vmem:[%s1428_s1 + $0x110] sm:$0xff]   ;;  %v1092_v1 = vld [vmem:[%s1428_s1 + $0x1c8] sm:$0xff]  }
  0x15   :  { %923 = vmatpush3.bf16.msra.mxu1 %v1054_v19  ;;  %902 = vmatprep.subr.bf16.mxu0 %v1055_v20  ;;  %v1086_v59 = vld [vmem:[%s1428_s1 + $0x198] sm:$0xff]   ;;  %v1090_v63 = vld [vmem:[%s1428_s1 + $0x190] sm:$0xff]   ;;  %v1093_v2 = vld [vmem:[%s1428_s1 + $0x108] sm:$0xff]  }
  0x16   :  { %924 = vmatprep.subr.bf16.mxu1 %v1056_v21  ;;  %v1094_v3 = vld [vmem:[%s1428_s1 + $0x188] sm:$0xff]   ;;  %v1095_v4 = vld [vmem:[%s1428_s1 + $0x140] sm:$0xff]   ;;  %v29_v9 = vld [vmem:[%s1427_s0 + $0x38] sm:$0xff] }
  0x17   :  { %v1096_v5 = vld [vmem:[%s1428_s1 + $0x1c0] sm:$0xff]   ;;  %v27_v8 = vld [vmem:[%s1427_s0 + $0x28] sm:$0xff]  ;;  %v37_v11 = vpack.c.bf16 %v29_v9, %v29_v9  ;;  %v28_v13 = vld [vmem:[%s1427_s0 + $0x30] sm:$0xff] }
  0x18   :  { %903 = vmatpush3.bf16.msra.mxu0 %v1057_v22  ;;  %v1097_v6 = vld [vmem:[%s1428_s1 + $0x100] sm:$0xff]   ;;  %v35_v10 = vpack.c.bf16 %v27_v8, %v27_v8 }
  0x19   :  { %925 = vmatpush3.bf16.msra.mxu1 %v1058_v23  ;;  %904 = vmatprep.subr.bf16.mxu0 %v1059_v24  ;;  %v1098_v7 = vld [vmem:[%s1428_s1 + $0x180] sm:$0xff]  }
  0x1a   :  { %926 = vmatprep.subr.bf16.mxu1 %v1060_v25  ;;  %v26_v12 = vld [vmem:[%s1427_s0 + $0x20] sm:$0xff] }
  0x1c   :  { %905 = vmatpush3.bf16.msra.mxu0 %v1061_v26 }
  0x1d   :  { %927 = vmatpush3.bf16.msra.mxu1 %v1062_v27  ;;  %906 = vmatprep.subr.bf16.mxu0 %v1063_v28 }
  0x1e   :  { %928 = vmatprep.subr.bf16.mxu1 %v1064_v29 }
  0x20   :  { %907 = vmatpush3.bf16.msra.mxu0 %v1065_v30 }
  0x21   :  { %929 = vmatpush3.bf16.msra.mxu1 %v1066_v31  ;;  %936 = vmatprep.subr.bf16.mxu0 %v1067_v40 }
  0x22   :  { %958 = vmatprep.subr.bf16.mxu1 %v1068_v41 }
  0x23   :  { %590 = vmatmul.mubr.bf16.vlgmr.msra.gmra.mxu0 %v30_v37 }
  0x24   :  { %630 = vmatmul.mubr.bf16.vlgmr.msra.gmra.mxu1 %v32_v39  ;;  %937 = vmatpush3.bf16.msra.mxu0 %v1069_v42 }
  0x25   :  { %959 = vmatpush3.bf16.msra.mxu1 %v1070_v43  ;;  %938 = vmatprep.subr.bf16.mxu0 %v1071_v44 }
  0x26   :  { %960 = vmatprep.subr.bf16.mxu1 %v1072_v45 }
  0x28   :  { %939 = vmatpush3.bf16.msra.mxu0 %v1073_v46 }
  0x29   :  { %961 = vmatpush3.bf16.msra.mxu1 %v1074_v47  ;;  %940 = vmatprep.subr.bf16.mxu0 %v1075_v48 }
  0x2a   :  { %962 = vmatprep.subr.bf16.mxu1 %v1076_v49 }
  0x2c   :  { %941 = vmatpush3.bf16.msra.mxu0 %v1077_v50 }
  0x2d   :  { %963 = vmatpush3.bf16.msra.mxu1 %v1078_v51  ;;  %942 = vmatprep.subr.bf16.mxu0 %v1079_v52 }
  0x2e   :  { %964 = vmatprep.subr.bf16.mxu1 %v1080_v53 }
  0x30   :  { %943 = vmatpush3.bf16.msra.mxu0 %v1081_v54 }
  0x31   :  { %965 = vmatpush3.bf16.msra.mxu1 %v1082_v55  ;;  %944 = vmatprep.subr.bf16.mxu0 %v1083_v56 }
  0x32   :  { %966 = vmatprep.subr.bf16.mxu1 %v1084_v57 }
  0x34   :  { %945 = vmatpush3.bf16.msra.mxu0 %v1085_v58 }
  0x35   :  { %967 = vmatpush3.bf16.msra.mxu1 %v1086_v59  ;;  %946 = vmatprep.subr.bf16.mxu0 %v1087_v60 }
  0x36   :  { %968 = vmatprep.subr.bf16.mxu1 %v1088_v61 }
  0x38   :  { %947 = vmatpush3.bf16.msra.mxu0 %v1089_v62 }
  0x39   :  { %969 = vmatpush3.bf16.msra.mxu1 %v1090_v63  ;;  %948 = vmatprep.subr.bf16.mxu0 %v1091_v0 }
  0x3a   :  { %970 = vmatprep.subr.bf16.mxu1 %v1092_v1 }
  0x3c   :  { %949 = vmatpush3.bf16.msra.mxu0 %v1093_v2 }
  0x3d   :  { %971 = vmatpush3.bf16.msra.mxu1 %v1094_v3  ;;  %950 = vmatprep.subr.bf16.mxu0 %v1095_v4 }
  0x3e   :  { %972 = vmatprep.subr.bf16.mxu1 %v1096_v5 }
  0x40   :  { %951 = vmatpush3.bf16.msra.mxu0 %v1097_v6 }
  0x41   :  { %10 = vsyncpa [#allocation3], 0  ;;  %973 = vmatpush3.bf16.msra.mxu1 %v1098_v7  ;;  %v34_v14 = vpack.c.bf16 %v26_v12, %v26_v12  ;;  %v36_v15 = vpack.c.bf16 %v28_v13, %v28_v13  ;;  %669 = vmatprep.mubr.bf16.mxu0 %v35_v10  ;;  %v733_v16 = vld [vmem:[%s1430_s3 + $0x78] sm:$0xff]  ;;  %v1121_v17 = vmov 0.0   ;;  %v732_v18 = vld [vmem:[%s1430_s3 + $0x70] sm:$0xff]  ;;  %vm1122_vm0 = vmmov 0  }
  0x42   :  { %709 = vmatprep.mubr.bf16.mxu1 %v37_v11  ;;  %997 = vmatprep.subr.mxu0 %v1121_v17  ;;  %v731_v19 = vld [vmem:[%s1430_s3 + $0x68] sm:$0xff]  ;;  %v730_v20 = vld [vmem:[%s1430_s3 + $0x60] sm:$0xff]  ;;  %v729_v21 = vld [vmem:[%s1430_s3 + $0x58] sm:$0xff] }
  0x43   :  { %670 = vmatmul.mubr.bf16.vlgmr.msra.gmra.mxu0 %v34_v14  ;;  %v728_v22 = vld [vmem:[%s1430_s3 + $0x50] sm:$0xff]  ;;  %v727_v23 = vld [vmem:[%s1430_s3 + $0x48] sm:$0xff]  ;;  %v726_v24 = vld [vmem:[%s1430_s3 + $0x40] sm:$0xff] }
  0x44   :  { %710 = vmatmul.mubr.bf16.vlgmr.msra.gmra.mxu1 %v36_v15  ;;  %998 = vmatpush3.msra.mxu0 %v733_v16  ;;  %v725_v25 = vld [vmem:[%s1430_s3 + $0x38] sm:$0xff]  ;;  %v724_v26 = vld [vmem:[%s1430_s3 + $0x30] sm:$0xff]  ;;  %v723_v27 = vld [vmem:[%s1430_s3 + $0x28] sm:$0xff] }
  0x45   :  { %999 = vmatprep.subr.mxu0 %v1121_v17  ;;  %v722_v28 = vld [vmem:[%s1430_s3 + $0x20] sm:$0xff]  ;;  %v721_v29 = vld [vmem:[%s1430_s3 + $0x18] sm:$0xff]  ;;  %v720_v30 = vld [vmem:[%s1430_s3 + $0x10] sm:$0xff]  ;;  %1029 = vmatprep.mubr.msk.f32.mxu0 %vm1122_vm0, %v1121_v17 }
  0x46   :  { %1000 = vmatpush3.msra.mxu0 %v732_v18  ;;  %v719_v31 = vld [vmem:[%s1430_s3 + $0x8] sm:$0xff]  ;;  %v718_v32 = vld [vmem:[%s1430_s3] sm:$0xff] }
  0x47   :  { %1001 = vmatprep.subr.mxu0 %v1121_v17  ;;  %v826_v42 = vld [vmem:[%s1429_s2] ss:$0 sm:$0xff]  ;;  %s1123_s2 = smov [#allocation2]  }
  0x48   :  { %1002 = vmatpush3.msra.mxu0 %v731_v19  ;;  %v891_v59 = vld [vmem:[%s1431_s4] ss:$0 sm:$0xff]  ;;  %s818_s18 = sshll.u32 %s1123_s2, 4  ;;  %s819_s18 = int_to_ptr.vmem [resolvable:$true] %s818_s18 }
  0x49   :  { %1003 = vmatprep.subr.mxu0 %v1121_v17  ;;  %s1099_s19 = scalar_lea.vmem %s819_s18, 128  ;;  %p1104_p1 = scmp.lt.s32.totalorder %s819_s18, %s819_s18 }
  0x4a   :  { %1004 = vmatpush3.msra.mxu0 %v730_v20  ;;  %p1100_p0 = scmp.ne.s32.totalorder %s819_s18, %s1099_s19  ;;  %p1105_p2 = scmp.lt.s32.totalorder %s1099_s19, %s1099_s19 }
  0x4b   :  { %1005 = vmatprep.subr.mxu0 %v1121_v17 }
  0x4c   :  { %1006 = vmatpush3.msra.mxu0 %v729_v21  ;;  %p1106_p3 = por %p1105_p2, %p1104_p1 }
  0x4d   :  { %1007 = vmatprep.subr.mxu0 %v1121_v17 }
  0x4e   :  { %1008 = vmatpush3.msra.mxu0 %v728_v22  ;;  %p1107_p4 = pnand %p1106_p3, %p1100_p0 }
  0x4f   :  { %1009 = vmatprep.subr.mxu0 %v1121_v17 }
  0x50   :  { %1010 = vmatpush3.msra.mxu0 %v727_v23 }
  0x51   :  { %1011 = vmatprep.subr.mxu0 %v1121_v17 }
  0x52   :  { %1012 = vmatpush3.msra.mxu0 %v726_v24 }
  0x53   :  { %1013 = vmatprep.subr.mxu0 %v1121_v17 }
  0x54   :  { %1014 = vmatpush3.msra.mxu0 %v725_v25 }
  0x55   :  { %1015 = vmatprep.subr.mxu0 %v1121_v17 }
  0x56   :  { %1016 = vmatpush3.msra.mxu0 %v724_v26 }
  0x57   :  { %1017 = vmatprep.subr.mxu0 %v1121_v17 }
  0x58   :  { %1018 = vmatpush3.msra.mxu0 %v723_v27 }
  0x59   :  { %1019 = vmatprep.subr.mxu0 %v1121_v17 }
  0x5a   :  { %1020 = vmatpush3.msra.mxu0 %v722_v28 }
  0x5b   :  { %1021 = vmatprep.subr.mxu0 %v1121_v17 }
  0x5c   :  { %1022 = vmatpush3.msra.mxu0 %v721_v29 }
  0x5d   :  { %1023 = vmatprep.subr.mxu0 %v1121_v17 }
  0x5e   :  { %1024 = vmatpush3.msra.mxu0 %v720_v30 }
  0x5f   :  { %1025 = vmatprep.subr.mxu0 %v1121_v17 }
  0x60   :  { %1026 = vmatpush3.msra.mxu0 %v719_v31 }
  0x61   :  { %1027 = vmatprep.subr.mxu0 %v1121_v17 }
  0x62   :  { %1028 = vmatpush3.msra.mxu0 %v718_v32 }
  0xe3   :  { %v908_v33 = vpop.f32.mrf.mxu0 }
  0xe4   :  { %v930_v34 = vpop.f32.mrf.mxu1 }
  0xe5   :  { %v909_v35 = vpop.f32.mrf.mxu0 }
  0xe6   :  { %v931_v36 = vpop.f32.mrf.mxu1  ;;  %v910_v41 = vadd.f32 %v909_v35, %v908_v33 }
  0xe7   :  { %v911_v37 = vpop.f32.mrf.mxu0  ;;  %v932_v44 = vadd.f32 %v931_v36, %v930_v34 }
  0xe8   :  { %v933_v38 = vpop.f32.mrf.mxu1  ;;  %v592_v43 = vadd.f32 %v910_v41, %v826_v42 }
  0xe9   :  { %v912_v39 = vpop.f32.mrf.mxu0 }
  0xea   :  { %v934_v40 = vpop.f32.mrf.mxu1  ;;  %v632_v48 = vadd.f32 %v932_v44, %v592_v43 }
 0x103   :  { %v952_v45 = vpop.f32.mrf.mxu0 }
 0x104   :  { %v974_v46 = vpop.f32.mrf.mxu1 }
 0x105   :  { %v953_v47 = vpop.f32.mrf.mxu0 }
 0x106   :  { %v954_v49 = vadd.f32 %v953_v47, %v952_v45  ;;  %v975_v50 = vpop.f32.mrf.mxu1 }
 0x107   :  { %v955_v51 = vpop.f32.mrf.mxu0  ;;  %v976_v53 = vadd.f32 %v975_v50, %v974_v46 }
 0x108   :  { %v672_v52 = vadd.f32 %v954_v49, %v632_v48  ;;  %v977_v54 = vpop.f32.mrf.mxu1 }
 0x109   :  { %v956_v55 = vpop.f32.mrf.mxu0 }
 0x10a   :  { %v712_v56 = vadd.f32 %v976_v53, %v672_v52  ;;  %v978_v57 = vpop.f32.mrf.mxu1 }
 0x10c   :  { %v717_v58 = vmax.f32 %v712_v56, 0.0 }
 0x10e   :  { %1030 = vmatmul.mubr.f32.vlgmr.msra.gmra.mxu0 %v717_v58 }
 0x1ce   :  { %v807_v60 = vpop.f32.mrf.mxu0 }
 0x1cf   :  { %v808_v61 = vadd.f32 %v891_v59, %v807_v60 }
 0x1d0   :  { %v1031_v62 = vpop.f32.mrf.mxu0 }
 0x1d1   :  { %811 = vst [vmem:[#allocation2] sm:$0xff] %v808_v61 }
 0x1d2   :  { %1110 = shalt.err (!%p1107_p4)
}
 0x1d3   :  { %821 = dma.vmem_to_hbm [thread:$0]  %s819_s18, 128, %s1432_s5, [#allocation3]  }
 0x1d4   :  { %1119 = dma.done.wait [#allocation3], 128  }
 0x1d5   :  { %1120 = vsyncadd [#allocation3], 4294967168 }
 0x1d6   :  { %825 = vsyncpa [#allocation3], 1 }

</bundles_post_ra>
